<compile_context>
chip_gen: v6e
topology: v6e:2x2x1
jax: 0.10.0
libtpu: 0.0.40
codegen_flags: <defaults>
</compile_context>

<pallas_src>
import math

import jax
import jax.numpy as jnp
import numpy as np
from jax.experimental import pallas as pl
from jax.experimental.pallas import tpu as pltpu


# ----------------------------- Pallas kernel -------------------------------- #

def _fixed_embedding_kernel(idx_ref, w_ref, o_ref):
    # idx_ref: [tm, 1]  int32 (flattened lookup indices, one tile)
    # w_ref:   [c_pad, d_model] f32 (full table, resident in VMEM)
    # o_ref:   [tm, d_model]
    idx = idx_ref[...]                                   # [tm, 1]
    tm = idx.shape[0]
    c_pad = w_ref.shape[0]
    # one-hot selection matrix, built on the VPU (2-D iota as required on TPU)
    iota = jax.lax.broadcasted_iota(jnp.int32, (tm, c_pad), 1)
    onehot = (iota == idx).astype(w_ref.dtype)           # [tm, c_pad]
    # gather == one-hot matmul on the MXU; HIGHEST precision keeps it exact
    o_ref[...] = jnp.dot(
        onehot,
        w_ref[...],
        preferred_element_type=jnp.float32,
        precision=jax.lax.Precision.HIGHEST,
    ).astype(o_ref.dtype)


# --------------------------- module-level wrapper ---------------------------- #

def _round_up(x, m):
    return ((x + m - 1) // m) * m


def make_fixed_embedding_table(c_in, d_model):
    """Frozen sinusoidal table, identical to the PyTorch FixedEmbedding init."""
    position = jnp.arange(c_in, dtype=jnp.float32)[:, None]                 # [c_in, 1]
    div_term = jnp.exp(
        jnp.arange(0, d_model, 2, dtype=jnp.float32) * (-(math.log(10000.0) / d_model))
    )                                                                       # [d_model//2]
    angles = position * div_term                                            # [c_in, d_model//2]
    # interleave: even columns = sin, odd columns = cos
    w = jnp.stack([jnp.sin(angles), jnp.cos(angles)], axis=-1).reshape(c_in, d_model)
    return w


def fixed_embedding(x, table, *, block_rows=512):
    """Pallas implementation of FixedEmbedding.forward: returns table[x].

    x:      integer array of any shape (values in [0, c_in)).
    table:  [c_in, d_model] float32 frozen sinusoidal table.
    returns x.shape + (d_model,), dtype of table.
    """
    c_in, d_model = table.shape
    orig_shape = x.shape

    # Pad the table's row axis to a sublane multiple (never selected rows).
    c_pad = _round_up(c_in, 8)
    if c_pad != c_in:
        table = jnp.pad(table, ((0, c_pad - c_in), (0, 0)))

    # Flatten all lookups into one row axis and tile it.
    flat = x.reshape(-1).astype(jnp.int32)
    n = flat.shape[0]
    tm = min(block_rows, _round_up(n, 8))
    n_pad = _round_up(n, tm)
    if n_pad != n:
        flat = jnp.pad(flat, (0, n_pad - n))
    idx2d = flat.reshape(n_pad, 1)

    out = pl.pallas_call(
        _fixed_embedding_kernel,
        out_shape=jax.ShapeDtypeStruct((n_pad, d_model), table.dtype),
        grid_spec=pltpu.PrefetchScalarGridSpec(
            num_scalar_prefetch=0,
            grid=(n_pad // tm,),
            in_specs=[
                # per-tile indices (pipelined)
                pl.BlockSpec((tm, 1), lambda i: (i, 0)),
                # full table, constant index_map -> stays resident in VMEM
                pl.BlockSpec((c_pad, d_model), lambda i: (0, 0)),
            ],
            out_specs=pl.BlockSpec((tm, d_model), lambda i: (i, 0)),
        ),
        compiler_params=pltpu.CompilerParams(
            dimension_semantics=("parallel",),
        ),
    )(idx2d, table)

    return out[:n].reshape(*orig_shape, d_model)


# ------------------------------ pure-JAX reference --------------------------- #

def _reference(x, table):
    return jnp.take(table, x, axis=0)


# ----------------------------------- main ------------------------------------ #

if __name__ == "__main__":
    # Small shapes consistent with FixedEmbedding use in TimeMixer's
    # TemporalEmbedding (e.g. hour-of-day vocab), d_model kept lane-dense.
    c_in, d_model = 24, 128
    B, L = 2, 16

    key = jax.random.PRNGKey(0)
    x = jax.random.randint(key, (B, L), 0, c_in, dtype=jnp.int32)

    table = make_fixed_embedding_table(c_in, d_model)

    out = fixed_embedding(x, table)
    out = jax.block_until_ready(out)

    ref = _reference(x, table)
    assert out.shape == (B, L, d_model)
    np.testing.assert_allclose(np.asarray(out), np.asarray(ref), rtol=1e-6, atol=1e-6)

    print("KERNEL_OK")
</pallas_src>

<mosaic_0001>
module attributes {stable_mosaic.version = 11 : i64} {
  func.func @_fixed_embedding_kernel(%arg0: i32, %arg1: memref<32x1xi32, #tpu.memory_space<vmem>>, %arg2: memref<24x128xf32, #tpu.memory_space<vmem>>, %arg3: memref<32x128xf32, #tpu.memory_space<vmem>>) attributes {dimension_semantics = [#tpu.dimension_semantics<parallel>], iteration_bounds = array<i64: 1>, scalar_prefetch = 0 : i64, scratch_operands = 0 : i64, tpu.core_type = #tpu.core_type<tc>, window_params = [{transform_indices = @transform_0, window_bounds = array<i64: 32, 1>}, {pipeline_mode = #tpu.pipeline_mode<synchronous>, transform_indices = @transform_1, window_bounds = array<i64: 24, 128>}, {transform_indices = @transform_2, window_bounds = array<i64: 32, 128>}]} {
    %c0 = arith.constant 0 : index
    %c0_0 = arith.constant 0 : index
    %0 = vector.load %arg1[%c0, %c0_0] : memref<32x1xi32, #tpu.memory_space<vmem>>, vector<32x1xi32>
    %1 = tpu.iota {dimensions = array<i32: 1>} : vector<32x24xi32>
    %2 = vector.broadcast %0 : vector<32x1xi32> to vector<32x24xi32>
    %3 = arith.cmpi eq, %1, %2 : vector<32x24xi32>
    %4 = arith.extui %3 : vector<32x24xi1> to vector<32x24xi32>
    %5 = arith.sitofp %4 : vector<32x24xi32> to vector<32x24xf32>
    %c0_1 = arith.constant 0 : index
    %c0_2 = arith.constant 0 : index
    %6 = vector.load %arg2[%c0_1, %c0_2] : memref<24x128xf32, #tpu.memory_space<vmem>>, vector<24x128xf32>
    %cst = arith.constant dense<0.000000e+00> : vector<32x128xf32>
    %7 = tpu.matmul %5, %6, %cst {dimension_numbers = #tpu.dot_dimension_numbers<[1], [0], [0], [1], [0, 0, 1, 1], [], []>, precision = #tpu.contract_precision<fp32>} : vector<32x24xf32>, vector<24x128xf32>, vector<32x128xf32> -> vector<32x128xf32>
    %c0_3 = arith.constant 0 : index
    %c0_4 = arith.constant 0 : index
    %8 = vector.load %arg3[%c0_3, %c0_4] : memref<32x128xf32, #tpu.memory_space<vmem>>, vector<32x128xf32>
    tpu.vector_store %arg3[%c0_3, %c0_4], %7 {strides = array<i32>} : memref<32x128xf32, #tpu.memory_space<vmem>>, vector<32x128xf32>,
    return
  }
  func.func @transform_0(%arg0: i32) -> (i32, i32) {
    %c0_i32 = arith.constant 0 : i32
    %c0_i32_0 = arith.constant 0 : i32
    return %arg0, %c0_i32 : i32, i32
  }
  func.func @transform_1(%arg0: i32) -> (i32, i32) {
    %c0_i32 = arith.constant 0 : i32
    %c0_i32_0 = arith.constant 0 : i32
    %c0_i32_1 = arith.constant 0 : i32
    return %c0_i32, %c0_i32_0 : i32, i32
  }
  func.func @transform_2(%arg0: i32) -> (i32, i32) {
    %c0_i32 = arith.constant 0 : i32
    %c0_i32_0 = arith.constant 0 : i32
    return %arg0, %c0_i32 : i32, i32
  }
}

</mosaic_0001>

<bundles_post_ra>
// kernel: tpu_custom_call.1
= control target key start
LH: loop header
LB: loop body
LE: loop exit
PB: predicated region body
PF: predicated region fallthrough
CT: control target
= control target key end

     0   :  { %v838_v2 = vmov 0   ;;  %s970_s0 = inlined_call_operand.vmem [shape: s32[32,1], index: 0, kind: input, shape index: {}]   ;;  %s971_s1 = inlined_call_operand.vmem [shape: f32[24,128], index: 1, kind: input, shape index: {}]   ;;  %s972_s2 = inlined_call_operand.hbm [shape: f32[32,128], index: 2, kind: output, shape index: {}]  }
   0x1   :  { %v14_v0 = vld [vmem:[%s970_s0 + $0x10] sm:$0xff]  ;;  %v12_v1 = vld [vmem:[%s970_s0] sm:$0xff]  ;;  %815 = vset.pattern.permute.xlu1 %v838_v2  ;;  %814 = vset.pattern.permute.xlu0 %v838_v2  ;;  %v43_v4 = vld [vmem:[%s971_s1 + $0x8] sm:$0xff] }
   0x2   :  { %v44_v3 = vld [vmem:[%s971_s1 + $0x10] sm:$0xff]  ;;  %25 = vperm.xlu1 %815, %v14_v0   ;;  %19 = vperm.xlu0 %814, %v12_v1   ;;  %v872_v6 = vand.u32 4294901760, %v43_v4  ;;  %v42_v7 = vld [vmem:[%s971_s1] sm:$0xff] }
   0x3   :  { %v870_v5 = vand.u32 4294901760, %v44_v3 }
   0x4   :  { %7 = vsyncpa [#allocation3], 0  ;;  %v15_v8 = vld [vmem:[%s970_s0 + $0x18] sm:$0xff]  ;;  %v13_v9 = vld [vmem:[%s970_s0 + $0x8] sm:$0xff]  ;;  %v883_v10 = vand.u32 4294901760, %v42_v7  ;;  %v889_v12 = vsub.f32 %v43_v4, %v872_v6  ;;  %v16_v23 = vlaneseq  ;;  %vm45_vm0 = vcmask 195584  }
   0x5   :  { %v886_v11 = vsub.f32 %v44_v3, %v870_v5  ;;  %737 = vmatprep.subr.mxu0 %v870_v5  ;;  %v839_v27 = vmov 0.0   ;;  %s840_s0 = smov [#allocation2]  }
   0x6   :  { %v893_v13 = vsub.f32 %v42_v7, %v883_v10  ;;  %738 = vmatpush3.msra.mxu0 %v870_v5  ;;  %28 = vperm.xlu1 %815, %v15_v8   ;;  %v900_v15 = vand.u32 4294901760, %v889_v12  ;;  %v17_v24 = vand.u32 127, %v16_v23  ;;  %s668_s1 = sshll.u32 %s840_s0, 4  ;;  %s669_s1 = int_to_ptr.vmem [resolvable:$true] %s668_s1 }
   0x7   :  { %22 = vperm.xlu0 %814, %v13_v9   ;;  %v897_v14 = vand.u32 4294901760, %v886_v11  ;;  %739 = vmatprep.subr.mxu0 %v872_v6  ;;  %s816_s23 = scalar_lea.vmem %s669_s1, 512  ;;  %p821_p1 = scmp.lt.s32.totalorder %s669_s1, %s669_s1 }
   0x8   :  { %v903_v16 = vand.u32 4294901760, %v893_v13  ;;  %v203_v18 = vsub.f32 %v889_v12, %v900_v15  ;;  %740 = vmatpush3.msra.mxu0 %v872_v6  ;;  %p817_p0 = scmp.ne.s32.totalorder %s669_s1, %s816_s23  ;;  %p822_p2 = scmp.lt.s32.totalorder %s816_s23, %s816_s23 }
   0x9   :  { %v196_v17 = vsub.f32 %v886_v11, %v897_v14  ;;  %741 = vmatprep.subr.mxu0 %v883_v10 }
   0xa   :  { %v210_v19 = vsub.f32 %v893_v13, %v903_v16  ;;  %v204_v21 = vand.u32 4294901760, %v203_v18  ;;  %742 = vmatpush3.msra.mxu0 %v883_v10  ;;  %p823_p3 = por %p822_p2, %p821_p1 }
   0xb   :  { %v197_v20 = vand.u32 4294901760, %v196_v17  ;;  %761 = vmatprep.subr.mxu0 %v886_v11 }
   0xc   :  { %v211_v22 = vand.u32 4294901760, %v210_v19  ;;  %p824_p4 = pnand %p823_p3, %p817_p0 }
   0xd   :  { %749 = vmatprep.subr.mxu1 %v197_v20 }
   0xe   :  { %750 = vmatpush3.msra.mxu1 %v197_v20 }
   0xf   :  { %751 = vmatprep.subr.mxu1 %v204_v21 }
  0x10   :  { %752 = vmatpush3.msra.mxu1 %v204_v21 }
  0x11   :  { %753 = vmatprep.subr.mxu1 %v211_v22 }
  0x12   :  { %754 = vmatpush3.msra.mxu1 %v211_v22 }
  0x13   :  { %773 = vmatprep.subr.mxu1 %v870_v5 }
  0x7d   :  { %v26_v25 = vpop.permute.xlu1 %25  ;;  %v20_v26 = vpop.permute.xlu0 %19 }
  0x7e   :  { %vm32_vm1 = vcmp.eq.s32.totalorder %v17_v24, %v26_v25  ;;  %vm30_vm2 = vcmp.eq.s32.totalorder %v17_v24, %v20_v26 }
  0x7f   :  { %v917_v28 = vsel %vm32_vm1, 1.0, %v839_v27  ;;  %v919_v29 = vsel %vm30_vm2, 1.0, %v839_v27 }
  0x80   :  { %v53_v30 = vsel %vm45_vm0, %v917_v28, 0  ;;  %755 = vmatprep.mubr.msk.f32.mxu1 %vm45_vm0, %v919_v29  ;;  %v47_v31 = vsel %vm45_vm0, %v919_v29, 0 }
  0x81   :  { %v147_v32 = vsub.f32 %v53_v30, %v53_v30  ;;  %v29_v33 = vpop.permute.xlu1 %28  ;;  %v127_v35 = vsub.f32 %v47_v31, %v47_v31 }
  0x82   :  { %v23_v34 = vpop.permute.xlu0 %22  ;;  %vm33_vm3 = vcmp.eq.s32.totalorder %v17_v24, %v29_v33 }
  0x83   :  { %vm31_vm4 = vcmp.eq.s32.totalorder %v17_v24, %v23_v34  ;;  %v682_v36 = vsel %vm33_vm3, 1.0, %v839_v27  ;;  %v128_v38 = vand.u32 4294901760, %v127_v35  ;;  %v148_v41 = vand.u32 4294901760, %v147_v32 }
  0x84   :  { %v680_v37 = vsel %vm31_vm4, 1.0, %v839_v27  ;;  %v56_v39 = vsel %vm45_vm0, %v682_v36, 0 }
  0x85   :  { %v50_v40 = vsel %vm45_vm0, %v680_v37, 0  ;;  %756 = vmatmul.mubr.msk.f32.vlgmr.msra.gmra.mxu1 %vm45_vm0, %v680_v37  ;;  %v157_v42 = vsub.f32 %v56_v39, %v56_v39  ;;  %v129_v44 = vsub.f32 %v127_v35, %v128_v38  ;;  %v149_v48 = vsub.f32 %v147_v32, %v148_v41 }
  0x86   :  { %v137_v43 = vsub.f32 %v50_v40, %v50_v40  ;;  %758 = vmatprep.mubr.msk.f32.mxu1 %vm45_vm0, %v917_v28  ;;  %774 = vmatpush3.msra.mxu1 %v870_v5 }
  0x87   :  { %775 = vmatprep.subr.mxu1 %v872_v6  ;;  %v130_v46 = vand.u32 4294901760, %v129_v44  ;;  %v158_v47 = vand.u32 4294901760, %v157_v42  ;;  %v150_v52 = vand.u32 4294901760, %v149_v48 }
  0x88   :  { %v138_v45 = vand.u32 4294901760, %v137_v43  ;;  %776 = vmatpush3.msra.mxu1 %v872_v6 }
  0x89   :  { %759 = vmatmul.mubr.msk.f32.gmra.mxu1 %vm45_vm0, %v682_v36  ;;  %777 = vmatprep.subr.mxu1 %v883_v10  ;;  %v159_v51 = vsub.f32 %v157_v42, %v158_v47 }
  0x8a   :  { %743 = vmatprep.mubr.f32.mxu0 %v130_v46  ;;  %779 = vmatprep.mubr.f32.mxu1 %v128_v38  ;;  %v139_v49 = vsub.f32 %v137_v43, %v138_v45 }
  0x8b   :  { %778 = vmatpush3.msra.mxu1 %v883_v10  ;;  %v160_v53 = vand.u32 4294901760, %v159_v51 }
  0x8c   :  { %v140_v50 = vand.u32 4294901760, %v139_v49  ;;  %797 = vmatprep.subr.mxu1 %v870_v5 }
  0x8d   :  { %780 = vmatmul.mubr.f32.vlgmr.msra.gmra.mxu1 %v138_v45 }
  0x8e   :  { %744 = vmatmul.mubr.f32.vlgmr.msra.gmra.mxu0 %v140_v50  ;;  %782 = vmatprep.mubr.f32.mxu1 %v148_v41 }
  0x8f   :  { %762 = vmatpush3.msra.mxu0 %v886_v11  ;;  %746 = vmatprep.mubr.f32.mxu0 %v150_v52 }
  0x90   :  { %763 = vmatprep.subr.mxu0 %v889_v12  ;;  %798 = vmatpush3.msra.mxu1 %v870_v5 }
  0x91   :  { %764 = vmatpush3.msra.mxu0 %v889_v12  ;;  %783 = vmatmul.mubr.f32.gmra.mxu1 %v158_v47 }
  0x92   :  { %799 = vmatprep.subr.mxu1 %v872_v6  ;;  %747 = vmatmul.mubr.f32.gmra.mxu0 %v160_v53 }
  0x93   :  { %800 = vmatpush3.msra.mxu1 %v872_v6  ;;  %803 = vmatprep.mubr.msk.f32.mxu1 %vm45_vm0, %v919_v29 }
  0x94   :  { %765 = vmatprep.subr.mxu0 %v893_v13  ;;  %767 = vmatprep.mubr.f32.mxu0 %v127_v35 }
  0x95   :  { %801 = vmatprep.subr.mxu1 %v883_v10  ;;  %766 = vmatpush3.msra.mxu0 %v893_v13 }
  0x96   :  { %802 = vmatpush3.msra.mxu1 %v883_v10  ;;  %785 = vmatprep.subr.mxu0 %v897_v14 }
  0x97   :  { %804 = vmatmul.mubr.msk.f32.vlgmr.msra.gmra.mxu1 %vm45_vm0, %v680_v37  ;;  %768 = vmatmul.mubr.f32.vlgmr.msra.gmra.mxu0 %v137_v43 }
  0x98   :  { %786 = vmatpush3.msra.mxu0 %v897_v14  ;;  %806 = vmatprep.mubr.msk.f32.mxu1 %vm45_vm0, %v917_v28 }
  0x99   :  { %770 = vmatprep.mubr.f32.mxu0 %v147_v32  ;;  %787 = vmatprep.subr.mxu0 %v900_v15 }
  0x9a   :  { %788 = vmatpush3.msra.mxu0 %v900_v15 }
  0x9b   :  { %807 = vmatmul.mubr.msk.f32.gmra.mxu1 %vm45_vm0, %v682_v36  ;;  %771 = vmatmul.mubr.f32.gmra.mxu0 %v157_v42 }
  0x9c   :  { %789 = vmatprep.subr.mxu0 %v903_v16  ;;  %791 = vmatprep.mubr.msk.f32.mxu0 %vm45_vm0, %v919_v29 }
  0x9d   :  { %790 = vmatpush3.msra.mxu0 %v903_v16 }
  0x9f   :  { %792 = vmatmul.mubr.msk.f32.vlgmr.msra.gmra.mxu0 %vm45_vm0, %v680_v37 }
  0xa0   :  { %794 = vmatprep.mubr.msk.f32.mxu0 %vm45_vm0, %v917_v28 }
  0xa3   :  { %795 = vmatmul.mubr.msk.f32.gmra.mxu0 %vm45_vm0, %v682_v36 }
 0x145   :  { %v757_v54 = vpop.f32.mrf.mxu1 }
 0x147   :  { %v248_v55 = vpop.f32.mrf.mxu1 }
 0x149   :  { %v760_v56 = vpop.f32.mrf.mxu1 }
 0x14b   :  { %v260_v57 = vpop.f32.mrf.mxu1 }
 0x14d   :  { %v781_v58 = vpop.f32.mrf.mxu1 }
 0x14e   :  { %v745_v59 = vpop.f32.mrf.mxu0 }
 0x14f   :  { %v441_v60 = vpop.f32.mrf.mxu1  ;;  %v255_v3 = vadd.f32 %v757_v54, %v745_v59 }
 0x150   :  { %v132_v61 = vpop.f32.mrf.mxu0 }
 0x151   :  { %v784_v63 = vpop.f32.mrf.mxu1  ;;  %v249_v5 = vadd.f32 %v248_v55, %v132_v61 }
 0x152   :  { %v748_v62 = vpop.f32.mrf.mxu0 }
 0x153   :  { %v457_v1 = vpop.f32.mrf.mxu1  ;;  %v267_v9 = vadd.f32 %v760_v56, %v748_v62 }
 0x154   :  { %v152_v0 = vpop.f32.mrf.mxu0 }
 0x155   :  { %v261_v12 = vadd.f32 %v260_v57, %v152_v0 }
 0x157   :  { %v769_v2 = vpop.f32.mrf.mxu0  ;;  %v805_v7 = vpop.f32.mrf.mxu1 }
 0x158   :  { %v352_v6 = vadd.f32 %v769_v2, %v255_v3 }
 0x159   :  { %v344_v4 = vpop.f32.mrf.mxu0  ;;  %v637_v15 = vpop.f32.mrf.mxu1 }
 0x15a   :  { %v345_v10 = vadd.f32 %v344_v4, %v249_v5  ;;  %v450_v14 = vadd.f32 %v781_v58, %v352_v6 }
 0x15b   :  { %v772_v8 = vpop.f32.mrf.mxu0  ;;  %v808_v24 = vpop.f32.mrf.mxu1 }
 0x15c   :  { %v366_v13 = vadd.f32 %v772_v8, %v267_v9  ;;  %v442_v19 = vadd.f32 %v441_v60, %v345_v10 }
 0x15d   :  { %v358_v11 = vpop.f32.mrf.mxu0  ;;  %v649_v32 = vpop.f32.mrf.mxu1 }
 0x15e   :  { %v359_v17 = vadd.f32 %v358_v11, %v261_v12  ;;  %v466_v23 = vadd.f32 %v784_v63, %v366_v13 }
 0x15f   :  { %v793_v16 = vpop.f32.mrf.mxu0 }
 0x160   :  { %v552_v18 = vadd.f32 %v793_v16, %v450_v14  ;;  %v458_v28 = vadd.f32 %v457_v1, %v359_v17 }
 0x161   :  { %v545_v20 = vpop.f32.mrf.mxu0 }
 0x162   :  { %v644_v21 = vadd.f32 %v805_v7, %v552_v18  ;;  %v546_v22 = vadd.f32 %v545_v20, %v442_v19 }
 0x163   :  { %v796_v25 = vpop.f32.mrf.mxu0 }
 0x164   :  { %660 = vst [vmem:[#allocation2 + $0x8] sm:$0xff] %v644_v21  ;;  %v638_v26 = vadd.f32 %v637_v15, %v546_v22  ;;  %v564_v27 = vadd.f32 %v796_v25, %v466_v23 }
 0x165   :  { %v557_v29 = vpop.f32.mrf.mxu0 }
 0x166   :  { %659 = vst [vmem:[#allocation2] sm:$0xff] %v638_v26  ;;  %v656_v30 = vadd.f32 %v808_v24, %v564_v27  ;;  %v558_v31 = vadd.f32 %v557_v29, %v458_v28 }
 0x168   :  { %662 = vst [vmem:[#allocation2 + $0x18] sm:$0xff] %v656_v30  ;;  %v650_v33 = vadd.f32 %v649_v32, %v558_v31 }
 0x16a   :  { %661 = vst [vmem:[#allocation2 + $0x10] sm:$0xff] %v650_v33 }
 0x16b   :  { %827 = shalt.err (!%p824_p4)
}
 0x16c   :  { %s841_s24 = smov 128   ;;  %s842_s25 = smov 8  }
 0x16d   :  { %674 = dma.vmem_to_hbm [thread:$0]  %s669_s1, 512, %s972_s2, [#allocation3], %s841_s24, %s841_s24, %s842_s25  }
 0x16e   :  { %836 = dma.done.wait [#allocation3], 512  }
 0x16f   :  { %837 = vsyncadd [#allocation3], 4294966784 }
 0x170   :  { %678 = vsyncpa [#allocation3], 1 }

</bundles_post_ra>
